<compile_context>
chip_gen: v7x
topology: tpu7x:2x2x1
jax: 0.10.0
libtpu: 0.0.40
codegen_flags: <defaults>
</compile_context>

<pallas_src>
import jax
import jax.numpy as jnp
from jax.experimental import pallas as pl
from jax.experimental.pallas import tpu as pltpu


_IN_TILE_BUDGET_BYTES = 2 * 1024 * 1024    # positional-table tile (reused across batch steps)
_OUT_TILE_BUDGET_BYTES = 16 * 1024 * 1024  # output tile: big lane-dense HBM writes
_VMEM_LIMIT_BYTES = 48 * 1024 * 1024       # 2x(in+out) double buffers + headroom, < v7x 64 MiB
_XLA_BYPASS_BYTES = 1 * 1024 * 1024        # below this, launch overhead dominates -> let XLA fuse
_MIN_SPLIT_BYTES = 2 * 1024 * 1024         # above this, force >=2 grid steps (v7x megacore)


def _sublane(dtype) -> int:
    """Minimum second-to-last-dim tiling for this dtype (f32:8, bf16:16, int8:32)."""
    return {4: 8, 2: 16, 1: 32}.get(jnp.dtype(dtype).itemsize, 8)


def _pick_row_tile(rows: int, cols: int, dtype) -> int:
    """Largest row tile that keeps the (r_blk, cols) table slab under the INPUT budget,
    is a multiple of the sublane tiling, and divides `rows` when possible."""
    itemsize = jnp.dtype(dtype).itemsize
    sub = _sublane(dtype)
    row_bytes = cols * itemsize
    if rows * row_bytes <= _IN_TILE_BUDGET_BYTES:
        return rows                                   # whole table slab fits
    max_rows = max(sub, (_IN_TILE_BUDGET_BYTES // row_bytes) // sub * sub)
    if rows % sub == 0:
        t = min(max_rows, rows) // sub * sub
        while t >= sub:
            if rows % t == 0:
                return t
            t -= sub
        return sub
    # Ragged row count: fixed sublane-multiple tile + cdiv grid (Pallas pads the
    # final partial input block and masks the corresponding output writes) --
    # never returns a full-(rows, cols) slab that could exceed VMEM.
    return max_rows


def _pick_batch_tile(batch: int, r_blk: int, cols: int, dtype) -> int:
    """Largest divisor of batch s.t. the (b_blk, r_blk, cols) output tile fits the OUTPUT budget."""
    itemsize = jnp.dtype(dtype).itemsize
    per_b = r_blk * cols * itemsize
    max_b = max(1, _OUT_TILE_BUDGET_BYTES // per_b)
    for cand in range(min(batch, max_b), 0, -1):
        if batch % cand == 0:
            return cand
    return 1


def _force_two_steps(batch: int, b_blk: int, rows: int, r_blk: int, dtype):
    """The grid collapsed to one step but the output is big enough to matter:
    split one 'parallel' axis so v7x's two TensorCores can share the work."""
    sub = _sublane(dtype)
    candidates = []
    if batch > 1:
        d = next(d for d in range(batch // 2, 0, -1) if batch % d == 0)
        candidates.append(("b", batch // d, d))
    t = (r_blk // 2) // sub * sub
    while t >= sub:
        if rows % t == 0:
            candidates.append(("r", rows // t, t))
            break
        t -= sub
    if not candidates:
        return b_blk, r_blk
    kind, _, val = min(candidates, key=lambda c: c[1])   # fewest total steps >= 2
    if kind == "b":
        return val, r_blk
    return b_blk, val


def _pos_emb_kernel(emb_ref, o_ref):
    # emb_ref: (r_blk, cols) rows of the positional table (lane-dense cols).
    # o_ref:   (b_blk, r_blk, cols) output slab -> single broadcast store.
    o_ref[...] = jnp.broadcast_to(emb_ref[...], o_ref.shape)


def positional_embedding(sequence: jax.Array, emb_table: jax.Array,
                         *, xla_bypass_bytes: int = _XLA_BYPASS_BYTES) -> jax.Array:
    """sequence: (B, C, S) -- only the shape is consulted (mirrors PyTorch forward).
    emb_table: (max_length, D) embedding weights.
    returns:   (B, S, D) with emb_table's dtype.
    """
    batch_size, _, seq_len = sequence.shape
    max_length, dim_model = emb_table.shape
    assert seq_len <= max_length, "sequence longer than positional table"

    table = emb_table[:seq_len]          # positions == arange(S) -> plain row slice
    dtype = table.dtype
    itemsize = jnp.dtype(dtype).itemsize
    out_bytes = batch_size * seq_len * dim_model * itemsize

    # Tiny outputs: kernel-launch/pipeline setup dominates a <=1 MiB copy, and XLA
    # can fuse the broadcast straight into the consumer.
    if out_bytes <= xla_bypass_bytes:
        return jnp.broadcast_to(table[None], (batch_size, seq_len, dim_model))

    # Lane-dense factorization: the output block's last dim should be a multiple
    # of 128 for unmasked vst stores.
    n_elems = seq_len * dim_model
    if dim_model % 128 == 0:
        rows, cols = seq_len, dim_model
    elif n_elems % 128 == 0:
        rows, cols = n_elems // 128, 128          # free row-major re-factorization
    else:
        # TODO(synk): S*D not a multiple of 128 -> trailing stores stay masked
        # (still correct, slightly slower store path).
        rows, cols = seq_len, dim_model
    table2 = table.reshape(rows, cols)

    r_blk = _pick_row_tile(rows, cols, dtype)
    b_blk = _pick_batch_tile(batch_size, r_blk, cols, dtype)
    if pl.cdiv(rows, r_blk) * (batch_size // b_blk) == 1 and out_bytes > _MIN_SPLIT_BYTES:
        b_blk, r_blk = _force_two_steps(batch_size, b_blk, rows, r_blk, dtype)
    grid_r = pl.cdiv(rows, r_blk)
    grid_b = batch_size // b_blk

    in_tile_bytes = r_blk * cols * itemsize
    out_tile_bytes = b_blk * r_blk * cols * itemsize
    vmem_limit = max(_VMEM_LIMIT_BYTES, 2 * (in_tile_bytes + out_tile_bytes) + (2 << 20))

    out = pl.pallas_call(
        _pos_emb_kernel,
        out_shape=jax.ShapeDtypeStruct((batch_size, rows, cols), dtype),
        grid_spec=pltpu.PrefetchScalarGridSpec(
            num_scalar_prefetch=0,
            # rows outer, batch inner: the table block index only depends on r, so
            # consecutive b-steps reuse the resident table tile (no redundant DMA).
            grid=(grid_r, grid_b),
            in_specs=[
                pl.BlockSpec((r_blk, cols), lambda r, b: (r, 0)),
            ],
            out_specs=pl.BlockSpec((b_blk, r_blk, cols), lambda r, b: (b, r, 0)),
        ),
        compiler_params=pltpu.CompilerParams(
            # Pure broadcast copy: both axes independent -> both "parallel", which
            # lets v7x's two TensorCores split the grid.
            dimension_semantics=("parallel", "parallel"),
            vmem_limit_bytes=vmem_limit,
        ),
        cost_estimate=pl.CostEstimate(
            flops=0, transcendentals=0,
            bytes_accessed=out_bytes + rows * cols * itemsize),
    )(table2)
    return out.reshape(batch_size, seq_len, dim_model)


if __name__ == "__main__":
    key = jax.random.PRNGKey(0)

    def check(batch, channels, seq_len, max_length, dim_model, **kw):
        k_emb, k_seq = jax.random.split(jax.random.fold_in(key, batch * 10000 + seq_len))
        # torch.nn.Embedding default init: N(0, 1)
        emb_table = jax.random.normal(k_emb, (max_length, dim_model), dtype=jnp.float32)
        # `sequence` content is irrelevant to the forward pass (only shapes are used)
        sequence = jax.random.normal(k_seq, (batch, channels, seq_len), dtype=jnp.float32)
        out = jax.block_until_ready(positional_embedding(sequence, emb_table, **kw))
        ref = jnp.broadcast_to(emb_table[:seq_len][None], (batch, seq_len, dim_model))
        assert out.shape == (batch, seq_len, dim_model)
        assert out.dtype == emb_table.dtype
        assert bool(jnp.array_equal(out, ref)), "mismatch vs reference"

    # Module-consistent small demo shape (tiny output -> XLA broadcast bypass).
    check(2, 4, 8, 16, 128)
    # Same small shape forced through the Pallas kernel path.
    check(2, 4, 8, 16, 128, xla_bypass_bytes=0)
    # Larger shape: exercises decoupled tile budgets + >=2-step grid split (megacore).
    check(8, 4, 512, 512, 256)
    # dim_model not a multiple of 128: exercises the lane-dense (rows, 128) refactor.
    check(8, 4, 1024, 1024, 96)

    print("KERNEL_OK")
</pallas_src>

<mosaic_0001>
module attributes {stable_mosaic.version = 11 : i64} {
  func.func @_pos_emb_kernel(%arg0: i32, %arg1: i32, %arg2: memref<8x128xf32, #tpu.memory_space<vmem>>, %arg3: memref<2x8x128xf32, #tpu.memory_space<vmem>>) attributes {dimension_semantics = [#tpu.dimension_semantics<parallel>, #tpu.dimension_semantics<parallel>], iteration_bounds = array<i64: 1, 1>, scalar_prefetch = 0 : i64, scratch_operands = 0 : i64, tpu.core_type = #tpu.core_type<tc>, window_params = [{transform_indices = @transform_0, window_bounds = array<i64: 8, 128>}, {transform_indices = @transform_1, window_bounds = array<i64: 2, 8, 128>}]} {
    %c0 = arith.constant 0 : index
    %c0_0 = arith.constant 0 : index
    %0 = vector.load %arg2[%c0, %c0_0] : memref<8x128xf32, #tpu.memory_space<vmem>>, vector<8x128xf32>
    %1 = vector.shape_cast %0 : vector<8x128xf32> to vector<1x8x128xf32>
    %2 = vector.broadcast %1 : vector<1x8x128xf32> to vector<2x8x128xf32>
    %c0_1 = arith.constant 0 : index
    %c0_2 = arith.constant 0 : index
    %c0_3 = arith.constant 0 : index
    %3 = vector.load %arg3[%c0_1, %c0_2, %c0_3] : memref<2x8x128xf32, #tpu.memory_space<vmem>>, vector<2x8x128xf32>
    tpu.vector_store %arg3[%c0_1, %c0_2, %c0_3], %2 {strides = array<i32>} : memref<2x8x128xf32, #tpu.memory_space<vmem>>, vector<2x8x128xf32>,
    return
  }
  func.func @transform_0(%arg0: i32, %arg1: i32) -> (i32, i32) {
    %c0_i32 = arith.constant 0 : i32
    %c0_i32_0 = arith.constant 0 : i32
    return %arg0, %c0_i32 : i32, i32
  }
  func.func @transform_1(%arg0: i32, %arg1: i32) -> (i32, i32, i32) {
    %c0_i32 = arith.constant 0 : i32
    %c0_i32_0 = arith.constant 0 : i32
    return %arg1, %arg0, %c0_i32 : i32, i32, i32
  }
}

</mosaic_0001>

<bundles_post_ra>
// kernel: tpu_custom_call.1
= control target key start
LH: loop header
LB: loop body
LE: loop exit
PB: predicated region body
PF: predicated region fallthrough
CT: control target
= control target key end

     0   :  { %6 = vsyncpa [#allocation3], 0  ;;  %s131_s0 = inlined_call_operand.hbm [shape: f32[8,128], index: 0, kind: input, shape index: {}]   ;;  %s132_s1 = inlined_call_operand.hbm [shape: f32[2,8,128], index: 1, kind: output, shape index: {}]  }
   0x1   :  { %7 = vsyncpa [#allocation4], 0  ;;  %s93_s6 = smov [#allocation2]   ;;  %s45_s10 = scalar_lea.hbm %s131_s0, 128 }
   0x2   :  { %s14_s7 = sshll.u32 %s93_s6, 4  ;;  %p46_p0 = scmp.ne.s32.totalorder %s131_s0, %s45_s10  ;;  %s15_s7 = int_to_ptr.vmem [resolvable:$true] %s14_s7 }
   0x3   :  { %p49_p1 = scmp.lt.u32.totalorder %s45_s10, %s131_s0 }
   0x5   :  { %p51_p2 = pnand %p49_p1, %p46_p0 }
   0x7   :  { %54 = shalt.err (!%p51_p2)
}
   0x8   :  { %s55_s15 = scalar_lea.vmem %s15_s7, 128  ;;  %p60_p4 = scmp.lt.s32.totalorder %s15_s7, %s15_s7 }
   0x9   :  { %p56_p3 = scmp.ne.s32.totalorder %s15_s7, %s55_s15  ;;  %p61_p5 = scmp.lt.s32.totalorder %s55_s15, %s55_s15 }
   0xb   :  { %p62_p6 = por %p61_p5, %p60_p4 }
   0xd   :  { %p63_p7 = pnand %p62_p6, %p56_p3 }
   0xf   :  { %66 = shalt.err (!%p63_p7)
}
  0x10   :  { %17 = dma.hbm_to_vmem [thread:$0]  %s131_s0, 128, %s15_s7, [#allocation3]  }
  0x11   :  { %89 = dma.done.wait [#allocation3], 128  }
  0x12   :  { %90 = vsyncadd [#allocation3], 4294967168  ;;  %s94_s18 = smov [#allocation5]   ;;  %v21_v0 = vld [vmem:[#allocation2] sm:$0xff] }
  0x13   :  { %s29_s19 = sshll.u32 %s94_s18, 4  ;;  %22 = vst [vmem:[#allocation5] sm:$0xff] %v21_v0  ;;  %23 = vst [vmem:[#allocation5 + $0x8] sm:$0xff] %v21_v0  ;;  %s30_s19 = int_to_ptr.vmem [resolvable:$true] %s29_s19 }
  0x14   :  { %s67_s20 = scalar_lea.vmem %s30_s19, 256  ;;  %p72_p9 = scmp.lt.s32.totalorder %s30_s19, %s30_s19 }
  0x15   :  { %p68_p8 = scmp.ne.s32.totalorder %s30_s19, %s67_s20  ;;  %p73_p10 = scmp.lt.s32.totalorder %s67_s20, %s67_s20 }
  0x17   :  { %p74_p11 = por %p73_p10, %p72_p9 }
  0x19   :  { %p75_p12 = pnand %p74_p11, %p68_p8 }
  0x1b   :  { %78 = shalt.err (!%p75_p12)
}
  0x1c   :  { %s79_s23 = scalar_lea.hbm %s132_s1, 256 }
  0x1d   :  { %p80_p13 = scmp.ne.s32.totalorder %s132_s1, %s79_s23  ;;  %p83_p0 = scmp.lt.u32.totalorder %s79_s23, %s132_s1 }
  0x1f   :  { %p85_p1 = pnand %p83_p0, %p80_p13 }
  0x21   :  { %88 = shalt.err (!%p85_p1)
}
  0x22   :  { %s95_s27 = smov 128   ;;  %s96_s28 = smov 8  }
  0x23   :  { %35 = dma.vmem_to_hbm [thread:$0]  %s30_s19, 256, %s132_s1, [#allocation4], %s95_s27, %s95_s27, %s96_s28  }
  0x24   :  { %91 = dma.done.wait [#allocation4], 256  }
  0x25   :  { %92 = vsyncadd [#allocation4], 4294967040 }
  0x26   :  { %39 = vsyncpa [#allocation3], 1 }
  0x27   :  { %40 = vsyncpa [#allocation4], 1 }

</bundles_post_ra>
